<compile_context>
chip_gen: v7x
topology: tpu7x:2x2x1
jax: 0.10.0
libtpu: 0.0.40
codegen_flags: <defaults>
</compile_context>

<pallas_src>
import functools

import jax
import jax.numpy as jnp
from jax.experimental import pallas as pl
from jax.experimental.pallas import tpu as pltpu

LANE = 128
TR_MAX = 2048  # max row tile: (2048, 128) f32 = 1 MiB per input block


def _round_up(v, m):
    return ((v + m - 1) // m) * m


def _iou_kernel(x_ref, y_ref, inter_ref, total_ref, *, rows_total, tr, steps):
    c = pl.program_id(0)   # core-split axis ("parallel")
    i = pl.program_id(1)   # row-tile axis ("arbitrary")
    t = c * steps + i      # logical (unclamped) tile index

    @pl.when(i == 0)
    def _():
        inter_ref[...] = jnp.zeros_like(inter_ref)
        total_ref[...] = jnp.zeros_like(total_ref)

    def accumulate(x, y):
        # Reduce the (tr, 128) tile to vreg-sized (8, 128) partials with pure
        # VPU vreg adds, then do a single small VMEM read-modify-write.
        inter_ref[0] = inter_ref[0] + (x * y).reshape(tr // 8, 8, LANE).sum(axis=0)
        total_ref[0] = total_ref[0] + (x + y).reshape(tr // 8, 8, LANE).sum(axis=0)

    tile_end = (t + 1) * tr

    # Fast path: tile fully in bounds (all interior tiles).
    @pl.when(tile_end <= rows_total)
    def _():
        accumulate(x_ref[...].astype(jnp.float32),
                   y_ref[...].astype(jnp.float32))

    # Slow path: tile contains out-of-bounds rows (at most the last valid tile
    # plus any fully-masked overshoot tile from the ceil core split).
    @pl.when(tile_end > rows_total)
    def _():
        row_ids = t * tr + jax.lax.broadcasted_iota(jnp.int32, (tr, LANE), 0)
        valid = row_ids < rows_total
        x = jnp.where(valid, x_ref[...].astype(jnp.float32), 0.0)
        y = jnp.where(valid, y_ref[...].astype(jnp.float32), 0.0)
        accumulate(x, y)


def iou_pallas(inputs, targets, smooth=1.0):
    x = jnp.ravel(inputs)
    y = jnp.ravel(targets)
    n = x.shape[0]

    rows = n // LANE
    n_main = rows * LANE

    # Tail of fewer than LANE elements: handled with plain jnp (tiny).
    if n_main < n:
        xt = x[n_main:].astype(jnp.float32)
        yt = y[n_main:].astype(jnp.float32)
        tail_inter = jnp.sum(xt * yt)
        tail_total = jnp.sum(xt + yt)
    else:
        tail_inter = jnp.float32(0.0)
        tail_total = jnp.float32(0.0)

    if rows == 0:
        inter = tail_inter
        total = tail_total
    else:
        if n_main == n:
            # Free reshape of the full contiguous array — no copy.
            x2 = x.reshape(rows, LANE)
            y2 = y.reshape(rows, LANE)
        else:
            # TODO(synk): this prefix slice materializes a copy of the main
            # portion when n % 128 != 0; a flat-layout in-kernel tail mask
            # would avoid the extra HBM traffic on that (uncommon) path.
            x2 = x[:n_main].reshape(rows, LANE)
            y2 = y[:n_main].reshape(rows, LANE)

        tr = min(TR_MAX, _round_up(rows, 8))
        n_tiles = pl.cdiv(rows, tr)
        # v7x: split the row range across the 2 TensorCores. Sequential (and
        # essentially free) on single-core v5e/v6e.
        num_splits = 2 if n_tiles >= 2 else 1
        steps = pl.cdiv(n_tiles, num_splits)

        kernel = functools.partial(
            _iou_kernel, rows_total=rows, tr=tr, steps=steps)

        def in_map(c, i):
            # Clamp so overshoot tiles (ceil split) never DMA out of bounds;
            # they are fully masked inside the kernel.
            return (jnp.minimum(c * steps + i, n_tiles - 1), 0)

        inter_p, total_p = pl.pallas_call(
            kernel,
            out_shape=(
                jax.ShapeDtypeStruct((num_splits, 8, LANE), jnp.float32),
                jax.ShapeDtypeStruct((num_splits, 8, LANE), jnp.float32),
            ),
            grid_spec=pltpu.PrefetchScalarGridSpec(
                num_scalar_prefetch=0,
                grid=(num_splits, steps),
                in_specs=[
                    pl.BlockSpec((tr, LANE), in_map),
                    pl.BlockSpec((tr, LANE), in_map),
                ],
                out_specs=[
                    pl.BlockSpec((1, 8, LANE), lambda c, i: (c, 0, 0)),
                    pl.BlockSpec((1, 8, LANE), lambda c, i: (c, 0, 0)),
                ],
            ),
            compiler_params=pltpu.CompilerParams(
                dimension_semantics=("parallel", "arbitrary"),
            ),
        )(x2, y2)

        inter = jnp.sum(inter_p) + tail_inter
        total = jnp.sum(total_p) + tail_total

    union = total - inter
    return (inter + smooth) / (union + smooth)


def iou_reference(inputs, targets, smooth=1.0):
    x = jnp.ravel(inputs).astype(jnp.float32)
    y = jnp.ravel(targets).astype(jnp.float32)
    inter = jnp.sum(x * y)
    total = jnp.sum(x + y)
    union = total - inter
    return (inter + smooth) / (union + smooth)


if __name__ == "__main__":
    key = jax.random.PRNGKey(0)
    k1, k2 = jax.random.split(key)
    # small shapes consistent with a segmentation-style IoU loss input (NCHW)
    shape = (2, 4, 16, 16)
    inputs = jax.nn.sigmoid(jax.random.normal(k1, shape, dtype=jnp.float32))
    targets = (jax.random.uniform(k2, shape) > 0.5).astype(jnp.float32)

    result = iou_pallas(inputs, targets, smooth=1.0)
    jax.block_until_ready(result)

    ref = iou_reference(inputs, targets, smooth=1.0)
    assert jnp.allclose(result, ref, rtol=1e-5, atol=1e-5), (result, ref)

    print("KERNEL_OK")
</pallas_src>

<mosaic_0001>
module attributes {stable_mosaic.version = 11 : i64} {
  func.func @_iou_kernel(%arg0: i32, %arg1: i32, %arg2: memref<16x128xf32, #tpu.memory_space<vmem>>, %arg3: memref<16x128xf32, #tpu.memory_space<vmem>>, %arg4: memref<1x8x128xf32, #tpu.memory_space<vmem>>, %arg5: memref<1x8x128xf32, #tpu.memory_space<vmem>>) attributes {dimension_semantics = [#tpu.dimension_semantics<parallel>, #tpu.dimension_semantics<arbitrary>], iteration_bounds = array<i64: 1, 1>, scalar_prefetch = 0 : i64, scratch_operands = 0 : i64, tpu.core_type = #tpu.core_type<tc>, window_params = [{transform_indices = @transform_0, window_bounds = array<i64: 16, 128>}, {transform_indices = @transform_1, window_bounds = array<i64: 16, 128>}, {transform_indices = @transform_2, window_bounds = array<i64: 1, 8, 128>}, {transform_indices = @transform_3, window_bounds = array<i64: 1, 8, 128>}]} {
    %c1_i32 = arith.constant 1 : i32
    %0 = arith.muli %arg0, %c1_i32 : i32
    %1 = arith.addi %0, %arg1 : i32
    %c0_i32 = arith.constant 0 : i32
    %2 = arith.cmpi eq, %arg1, %c0_i32 : i32
    %3 = arith.extui %2 : i1 to i32
    %c0_i32_0 = arith.constant 0 : i32
    %4 = arith.cmpi ne, %3, %c0_i32_0 : i32
    scf.if %4 {
      %cst = arith.constant 0.000000e+00 : f32
      %13 = vector.broadcast %cst : f32 to vector<1x8x128xf32>
      %c0 = arith.constant 0 : index
      %c0_6 = arith.constant 0 : index
      %c0_7 = arith.constant 0 : index
      %14 = vector.load %arg4[%c0, %c0_6, %c0_7] : memref<1x8x128xf32, #tpu.memory_space<vmem>>, vector<1x8x128xf32>
      tpu.vector_store %arg4[%c0, %c0_6, %c0_7], %13 {strides = array<i32>} : memref<1x8x128xf32, #tpu.memory_space<vmem>>, vector<1x8x128xf32>,
      %cst_8 = arith.constant 0.000000e+00 : f32
      %15 = vector.broadcast %cst_8 : f32 to vector<1x8x128xf32>
      %c0_9 = arith.constant 0 : index
      %c0_10 = arith.constant 0 : index
      %c0_11 = arith.constant 0 : index
      %16 = vector.load %arg5[%c0_9, %c0_10, %c0_11] : memref<1x8x128xf32, #tpu.memory_space<vmem>>, vector<1x8x128xf32>
      tpu.vector_store %arg5[%c0_9, %c0_10, %c0_11], %15 {strides = array<i32>} : memref<1x8x128xf32, #tpu.memory_space<vmem>>, vector<1x8x128xf32>,
    } else {
    }
    %c1_i32_1 = arith.constant 1 : i32
    %5 = arith.addi %1, %c1_i32_1 : i32
    %c16_i32 = arith.constant 16 : i32
    %6 = arith.muli %5, %c16_i32 : i32
    %c16_i32_2 = arith.constant 16 : i32
    %7 = arith.cmpi sle, %6, %c16_i32_2 : i32
    %8 = arith.extui %7 : i1 to i32
    %c0_i32_3 = arith.constant 0 : i32
    %9 = arith.cmpi ne, %8, %c0_i32_3 : i32
    scf.if %9 {
      %c0 = arith.constant 0 : index
      %c0_6 = arith.constant 0 : index
      %13 = vector.load %arg2[%c0, %c0_6] : memref<16x128xf32, #tpu.memory_space<vmem>>, vector<16x128xf32>
      %c0_7 = arith.constant 0 : index
      %c0_8 = arith.constant 0 : index
      %14 = vector.load %arg3[%c0_7, %c0_8] : memref<16x128xf32, #tpu.memory_space<vmem>>, vector<16x128xf32>
      %c0_9 = arith.constant 0 : index
      %c0_10 = arith.constant 0 : index
      %c0_11 = arith.constant 0 : index
      %15 = vector.load %arg4[%c0_9, %c0_10, %c0_11] : memref<1x8x128xf32, #tpu.memory_space<vmem>>, vector<1x8x128xf32>
      %16 = vector.shape_cast %15 : vector<1x8x128xf32> to vector<8x128xf32>
      %17 = arith.mulf %13, %14 : vector<16x128xf32>
      %18 = vector.shape_cast %17 : vector<16x128xf32> to vector<2x8x128xf32>
      %cst = arith.constant dense<0.000000e+00> : vector<8x128xf32>
      %19 = vector.multi_reduction <add>, %18, %cst [0] : vector<2x8x128xf32> to vector<8x128xf32>
      %20 = arith.addf %16, %19 : vector<8x128xf32>
      %c0_12 = arith.constant 0 : index
      %c0_13 = arith.constant 0 : index
      %c0_14 = arith.constant 0 : index
      %21 = vector.load %arg4[%c0_12, %c0_13, %c0_14] : memref<1x8x128xf32, #tpu.memory_space<vmem>>, vector<1x8x128xf32>
      %22 = vector.shape_cast %21 : vector<1x8x128xf32> to vector<8x128xf32>
      %23 = vector.shape_cast %20 : vector<8x128xf32> to vector<1x8x128xf32>
      tpu.vector_store %arg4[%c0_12, %c0_13, %c0_14], %23 {strides = array<i32>} : memref<1x8x128xf32, #tpu.memory_space<vmem>>, vector<1x8x128xf32>,
      %c0_15 = arith.constant 0 : index
      %c0_16 = arith.constant 0 : index
      %c0_17 = arith.constant 0 : index
      %24 = vector.load %arg5[%c0_15, %c0_16, %c0_17] : memref<1x8x128xf32, #tpu.memory_space<vmem>>, vector<1x8x128xf32>
      %25 = vector.shape_cast %24 : vector<1x8x128xf32> to vector<8x128xf32>
      %26 = arith.addf %13, %14 : vector<16x128xf32>
      %27 = vector.shape_cast %26 : vector<16x128xf32> to vector<2x8x128xf32>
      %cst_18 = arith.constant dense<0.000000e+00> : vector<8x128xf32>
      %28 = vector.multi_reduction <add>, %27, %cst_18 [0] : vector<2x8x128xf32> to vector<8x128xf32>
      %29 = arith.addf %25, %28 : vector<8x128xf32>
      %c0_19 = arith.constant 0 : index
      %c0_20 = arith.constant 0 : index
      %c0_21 = arith.constant 0 : index
      %30 = vector.load %arg5[%c0_19, %c0_20, %c0_21] : memref<1x8x128xf32, #tpu.memory_space<vmem>>, vector<1x8x128xf32>
      %31 = vector.shape_cast %30 : vector<1x8x128xf32> to vector<8x128xf32>
      %32 = vector.shape_cast %29 : vector<8x128xf32> to vector<1x8x128xf32>
      tpu.vector_store %arg5[%c0_19, %c0_20, %c0_21], %32 {strides = array<i32>} : memref<1x8x128xf32, #tpu.memory_space<vmem>>, vector<1x8x128xf32>,
    } else {
    }
    %c16_i32_4 = arith.constant 16 : i32
    %10 = arith.cmpi sgt, %6, %c16_i32_4 : i32
    %11 = arith.extui %10 : i1 to i32
    %c0_i32_5 = arith.constant 0 : i32
    %12 = arith.cmpi ne, %11, %c0_i32_5 : i32
    scf.if %12 {
      %c16_i32_6 = arith.constant 16 : i32
      %13 = arith.muli %1, %c16_i32_6 : i32
      %14 = tpu.iota {dimensions = array<i32: 0>} : vector<16x128xi32>
      %15 = vector.broadcast %13 : i32 to vector<16x128xi32>
      %16 = arith.addi %15, %14 : vector<16x128xi32>
      %c16_i32_7 = arith.constant 16 : i32
      %17 = vector.broadcast %c16_i32_7 : i32 to vector<16x128xi32>
      %18 = arith.cmpi slt, %16, %17 : vector<16x128xi32>
      %c0 = arith.constant 0 : index
      %c0_8 = arith.constant 0 : index
      %19 = vector.load %arg2[%c0, %c0_8] : memref<16x128xf32, #tpu.memory_space<vmem>>, vector<16x128xf32>
      %cst = arith.constant 0.000000e+00 : f32
      %20 = vector.broadcast %cst : f32 to vector<16x128xf32>
      %21 = arith.select %18, %19, %20 : vector<16x128xi1>, vector<16x128xf32>
      %c0_9 = arith.constant 0 : index
      %c0_10 = arith.constant 0 : index
      %22 = vector.load %arg3[%c0_9, %c0_10] : memref<16x128xf32, #tpu.memory_space<vmem>>, vector<16x128xf32>
      %cst_11 = arith.constant 0.000000e+00 : f32
      %23 = vector.broadcast %cst_11 : f32 to vector<16x128xf32>
      %24 = arith.select %18, %22, %23 : vector<16x128xi1>, vector<16x128xf32>
      %c0_12 = arith.constant 0 : index
      %c0_13 = arith.constant 0 : index
      %c0_14 = arith.constant 0 : index
      %25 = vector.load %arg4[%c0_12, %c0_13, %c0_14] : memref<1x8x128xf32, #tpu.memory_space<vmem>>, vector<1x8x128xf32>
      %26 = vector.shape_cast %25 : vector<1x8x128xf32> to vector<8x128xf32>
      %27 = arith.mulf %21, %24 : vector<16x128xf32>
      %28 = vector.shape_cast %27 : vector<16x128xf32> to vector<2x8x128xf32>
      %cst_15 = arith.constant dense<0.000000e+00> : vector<8x128xf32>
      %29 = vector.multi_reduction <add>, %28, %cst_15 [0] : vector<2x8x128xf32> to vector<8x128xf32>
      %30 = arith.addf %26, %29 : vector<8x128xf32>
      %c0_16 = arith.constant 0 : index
      %c0_17 = arith.constant 0 : index
      %c0_18 = arith.constant 0 : index
      %31 = vector.load %arg4[%c0_16, %c0_17, %c0_18] : memref<1x8x128xf32, #tpu.memory_space<vmem>>, vector<1x8x128xf32>
      %32 = vector.shape_cast %31 : vector<1x8x128xf32> to vector<8x128xf32>
      %33 = vector.shape_cast %30 : vector<8x128xf32> to vector<1x8x128xf32>
      tpu.vector_store %arg4[%c0_16, %c0_17, %c0_18], %33 {strides = array<i32>} : memref<1x8x128xf32, #tpu.memory_space<vmem>>, vector<1x8x128xf32>,
      %c0_19 = arith.constant 0 : index
      %c0_20 = arith.constant 0 : index
      %c0_21 = arith.constant 0 : index
      %34 = vector.load %arg5[%c0_19, %c0_20, %c0_21] : memref<1x8x128xf32, #tpu.memory_space<vmem>>, vector<1x8x128xf32>
      %35 = vector.shape_cast %34 : vector<1x8x128xf32> to vector<8x128xf32>
      %36 = arith.addf %21, %24 : vector<16x128xf32>
      %37 = vector.shape_cast %36 : vector<16x128xf32> to vector<2x8x128xf32>
      %cst_22 = arith.constant dense<0.000000e+00> : vector<8x128xf32>
      %38 = vector.multi_reduction <add>, %37, %cst_22 [0] : vector<2x8x128xf32> to vector<8x128xf32>
      %39 = arith.addf %35, %38 : vector<8x128xf32>
      %c0_23 = arith.constant 0 : index
      %c0_24 = arith.constant 0 : index
      %c0_25 = arith.constant 0 : index
      %40 = vector.load %arg5[%c0_23, %c0_24, %c0_25] : memref<1x8x128xf32, #tpu.memory_space<vmem>>, vector<1x8x128xf32>
      %41 = vector.shape_cast %40 : vector<1x8x128xf32> to vector<8x128xf32>
      %42 = vector.shape_cast %39 : vector<8x128xf32> to vector<1x8x128xf32>
      tpu.vector_store %arg5[%c0_23, %c0_24, %c0_25], %42 {strides = array<i32>} : memref<1x8x128xf32, #tpu.memory_space<vmem>>, vector<1x8x128xf32>,
    } else {
    }
    return
  }
  func.func @transform_0(%arg0: i32, %arg1: i32) -> (i32, i32) {
    %c1_i32 = arith.constant 1 : i32
    %0 = arith.muli %arg0, %c1_i32 : i32
    %1 = arith.addi %0, %arg1 : i32
    %c0_i32 = arith.constant 0 : i32
    %2 = arith.minsi %1, %c0_i32 : i32
    %c0_i32_0 = arith.constant 0 : i32
    %c0_i32_1 = arith.constant 0 : i32
    return %2, %c0_i32_0 : i32, i32
  }
  func.func @transform_1(%arg0: i32, %arg1: i32) -> (i32, i32) {
    %c1_i32 = arith.constant 1 : i32
    %0 = arith.muli %arg0, %c1_i32 : i32
    %1 = arith.addi %0, %arg1 : i32
    %c0_i32 = arith.constant 0 : i32
    %2 = arith.minsi %1, %c0_i32 : i32
    %c0_i32_0 = arith.constant 0 : i32
    %c0_i32_1 = arith.constant 0 : i32
    return %2, %c0_i32_0 : i32, i32
  }
  func.func @transform_2(%arg0: i32, %arg1: i32) -> (i32, i32, i32) {
    %c0_i32 = arith.constant 0 : i32
    %c0_i32_0 = arith.constant 0 : i32
    %c0_i32_1 = arith.constant 0 : i32
    return %arg0, %c0_i32, %c0_i32_0 : i32, i32, i32
  }
  func.func @transform_3(%arg0: i32, %arg1: i32) -> (i32, i32, i32) {
    %c0_i32 = arith.constant 0 : i32
    %c0_i32_0 = arith.constant 0 : i32
    %c0_i32_1 = arith.constant 0 : i32
    return %arg0, %c0_i32, %c0_i32_0 : i32, i32, i32
  }
}

</mosaic_0001>

<bundles_post_ra>
// kernel: tpu_custom_call.1
= control target key start
LH: loop header
LB: loop body
LE: loop exit
PB: predicated region body
PF: predicated region fallthrough
CT: control target
= control target key end

     0   :  { %9 = vsyncpa [#allocation3], 0  ;;  %s336_s0 = inlined_call_operand.hbm [shape: f32[16,128], index: 0, kind: input, shape index: {}]   ;;  %s337_s1 = inlined_call_operand.hbm [shape: f32[16,128], index: 1, kind: input, shape index: {}]   ;;  %s338_s2 = inlined_call_operand.hbm [shape: f32[1,8,128], index: 2, kind: output, shape index: {0}]   ;;  %s339_s3 = inlined_call_operand.hbm [shape: f32[1,8,128], index: 3, kind: output, shape index: {1}]  }
   0x1   :  { %10 = vsyncpa [#allocation6], 0 }
   0x2   :  { %11 = vsyncpa [#allocation4], 0 }
   0x3   :  { %12 = vsyncpa [#allocation9], 0  ;;  %s262_s12 = smov [#allocation2]   ;;  %s166_s16 = scalar_lea.hbm %s336_s0, 256 }
   0x4   :  { %s24_s13 = sshll.u32 %s262_s12, 4  ;;  %p167_p0 = scmp.ne.s32.totalorder %s336_s0, %s166_s16  ;;  %s25_s13 = int_to_ptr.vmem [resolvable:$true] %s24_s13 }
   0x5   :  { %p170_p1 = scmp.lt.u32.totalorder %s166_s16, %s336_s0 }
   0x7   :  { %p172_p2 = pnand %p170_p1, %p167_p0 }
   0x9   :  { %175 = shalt.err (!%p172_p2)
}
   0xa   :  { %s176_s21 = scalar_lea.vmem %s25_s13, 256  ;;  %p181_p4 = scmp.lt.s32.totalorder %s25_s13, %s25_s13 }
   0xb   :  { %p177_p3 = scmp.ne.s32.totalorder %s25_s13, %s176_s21  ;;  %p182_p5 = scmp.lt.s32.totalorder %s176_s21, %s176_s21 }
   0xd   :  { %p183_p6 = por %p182_p5, %p181_p4 }
   0xf   :  { %p184_p7 = pnand %p183_p6, %p177_p3 }
  0x11   :  { %187 = shalt.err (!%p184_p7)
}
  0x12   :  { %s263_s22 = smov 128   ;;  %s264_s23 = smov 8  }
  0x13   :  { %30 = dma.hbm_to_vmem [thread:$0]  %s336_s0, 256, %s25_s13, [#allocation3], %s263_s22, %s263_s22, %s264_s23  }
  0x14   :  { %s265_s26 = smov [#allocation5]   ;;  %s188_s30 = scalar_lea.hbm %s337_s1, 256 }
  0x15   :  { %s42_s27 = sshll.u32 %s265_s26, 4  ;;  %p189_p8 = scmp.ne.s32.totalorder %s337_s1, %s188_s30  ;;  %s43_s27 = int_to_ptr.vmem [resolvable:$true] %s42_s27 }
  0x16   :  { %p192_p9 = scmp.lt.u32.totalorder %s188_s30, %s337_s1 }
  0x18   :  { %p194_p10 = pnand %p192_p9, %p189_p8 }
  0x1a   :  { %197 = shalt.err (!%p194_p10)
}
  0x1b   :  { %s198_s8 = scalar_lea.vmem %s43_s27, 256  ;;  %p203_p12 = scmp.lt.s32.totalorder %s43_s27, %s43_s27 }
  0x1c   :  { %p199_p11 = scmp.ne.s32.totalorder %s43_s27, %s198_s8  ;;  %p204_p13 = scmp.lt.s32.totalorder %s198_s8, %s198_s8 }
  0x1e   :  { %p205_p0 = por %p204_p13, %p203_p12 }
  0x20   :  { %p206_p1 = pnand %p205_p0, %p199_p11 }
  0x22   :  { %209 = shalt.err (!%p206_p1)
}
  0x23   :  { %48 = dma.hbm_to_vmem [thread:$0]  %s337_s1, 256, %s43_s27, [#allocation6], %s263_s22, %s263_s22, %s264_s23  }
  0x24   :  { %254 = dma.done.wait [#allocation3], 256  }
  0x25   :  { %255 = vsyncadd [#allocation3], 4294967040 }
  0x26   :  { %256 = dma.done.wait [#allocation6], 256  }
  0x27   :  { %257 = vsyncadd [#allocation6], 4294967040  ;;  %v76_v0 = vld [vmem:[#allocation2] sm:$0xff]  ;;  %v77_v1 = vld [vmem:[#allocation2 + $0x8] sm:$0xff]  ;;  %s266_s10 = smov [#allocation7]   ;;  %s267_s12 = smov [#allocation8]  }
  0x28   :  { %v78_v2 = vld [vmem:[#allocation5] sm:$0xff]  ;;  %v79_v3 = vld [vmem:[#allocation5 + $0x8] sm:$0xff]  ;;  %s131_s11 = sshll.u32 %s266_s10, 4  ;;  %s141_s13 = sshll.u32 %s267_s12, 4  ;;  %s132_s11 = int_to_ptr.vmem [resolvable:$true] %s131_s11  ;;  %s142_s13 = int_to_ptr.vmem [resolvable:$true] %s141_s13 }
  0x29   :  { %v81_v4 = vmul.f32 %v78_v2, %v76_v0  ;;  %v87_v5 = vadd.f32 %v78_v2, %v76_v0  ;;  %v82_v6 = vmul.f32 %v79_v3, %v77_v1  ;;  %v88_v7 = vadd.f32 %v79_v3, %v77_v1  ;;  %s210_s1 = scalar_lea.vmem %s132_s11, 128  ;;  %p215_p3 = scmp.lt.s32.totalorder %s132_s11, %s132_s11 }
  0x2a   :  { %p211_p2 = scmp.ne.s32.totalorder %s132_s11, %s210_s1  ;;  %p216_p4 = scmp.lt.s32.totalorder %s210_s1, %s210_s1 }
  0x2b   :  { %v83_v8 = vadd.f32 %v82_v6, %v81_v4  ;;  %v89_v9 = vadd.f32 %v88_v7, %v87_v5 }
  0x2c   :  { %p217_p5 = por %p216_p4, %p215_p3 }
  0x2d   :  { %85 = vst [vmem:[#allocation7] sm:$0xff] %v83_v8  ;;  %91 = vst [vmem:[#allocation8] sm:$0xff] %v89_v9 }
  0x2e   :  { %p218_p6 = pnand %p217_p5, %p211_p2 }
  0x30   :  { %221 = shalt.err (!%p218_p6)
}
  0x31   :  { %s222_s16 = scalar_lea.hbm %s338_s2, 128 }
  0x32   :  { %p223_p7 = scmp.ne.s32.totalorder %s338_s2, %s222_s16  ;;  %p226_p8 = scmp.lt.u32.totalorder %s222_s16, %s338_s2 }
  0x34   :  { %p228_p9 = pnand %p226_p8, %p223_p7 }
  0x36   :  { %231 = shalt.err (!%p228_p9)
}
  0x37   :  { %134 = dma.vmem_to_hbm [thread:$0]  %s132_s11, 128, %s338_s2, [#allocation4]  }
  0x38   :  { %s232_s23 = scalar_lea.vmem %s142_s13, 128  ;;  %p237_p11 = scmp.lt.s32.totalorder %s142_s13, %s142_s13 }
  0x39   :  { %p233_p10 = scmp.ne.s32.totalorder %s142_s13, %s232_s23  ;;  %p238_p12 = scmp.lt.s32.totalorder %s232_s23, %s232_s23 }
  0x3b   :  { %p239_p13 = por %p238_p12, %p237_p11 }
  0x3d   :  { %p240_p0 = pnand %p239_p13, %p233_p10 }
  0x3f   :  { %243 = shalt.err (!%p240_p0)
}
  0x40   :  { %s244_s26 = scalar_lea.hbm %s339_s3, 128 }
  0x41   :  { %p245_p1 = scmp.ne.s32.totalorder %s339_s3, %s244_s26  ;;  %p248_p2 = scmp.lt.u32.totalorder %s244_s26, %s339_s3 }
  0x43   :  { %p250_p3 = pnand %p248_p2, %p245_p1 }
  0x45   :  { %253 = shalt.err (!%p250_p3)
}
  0x46   :  { %144 = dma.vmem_to_hbm [thread:$0]  %s142_s13, 128, %s339_s3, [#allocation9]  }
  0x47   :  { %258 = dma.done.wait [#allocation4], 128  }
  0x48   :  { %259 = vsyncadd [#allocation4], 4294967168 }
  0x49   :  { %260 = dma.done.wait [#allocation9], 128  }
  0x4a   :  { %261 = vsyncadd [#allocation9], 4294967168 }
  0x4b   :  { %151 = vsyncpa [#allocation3], 1 }
  0x4c   :  { %152 = vsyncpa [#allocation6], 1 }
  0x4d   :  { %153 = vsyncpa [#allocation4], 1 }
  0x4e   :  { %154 = vsyncpa [#allocation9], 1 }

</bundles_post_ra>
